<compile_context>
chip_gen: v7x
topology: tpu7x:2x2x1
jax: 0.10.0
libtpu: 0.0.40
codegen_flags: <defaults>
</compile_context>

<pallas_src>
import jax
import jax.numpy as jnp
from jax.experimental import pallas as pl
from jax.experimental.pallas import tpu as pltpu

NUM_LAYERS = 1          # matches Classifier(num_layers=1)
IN_DIM = 32
HID_DIM = 124           # logical (PyTorch) hidden width
HID_PAD = 128           # padded to full lane width
OUT_DIM = 4             # logical output width
OUT_PAD = 128           # lane-dense padded output width
MAX_TB = 512            # max batch tile (multiple of 8)


def _mlp_kernel(x_ref, w1_ref, b1_ref, wh_ref, bh_ref, w2_ref, b2_ref, o_ref):
    """One batch tile of the whole network.

    x_ref : [TB, 32]          w1_ref: [32, 128]     b1_ref: [1, 128]
    wh_ref: [L, 128, 128]     bh_ref: [L, 1, 128]
    w2_ref: [128, 128]        b2_ref: [1, 128]      o_ref : [TB, 128]
    """
    # fc1 + ReLU (Dropout -> identity at inference). Bias+ReLU on f32 accumulator.
    h = jnp.dot(x_ref[...], w1_ref[...], preferred_element_type=jnp.float32)
    h = jnp.maximum(h + b1_ref[...], 0.0)

    # hidden layers: Linear(128,128) + ReLU (+ Dropout identity).
    # NUM_LAYERS is a static Python constant -> unrolled at trace time.
    for l in range(NUM_LAYERS):
        h = jnp.dot(h, wh_ref[l], preferred_element_type=jnp.float32)
        h = jnp.maximum(h + bh_ref[l], 0.0)

    # fc2 (no activation; softmax not applied in forward()).
    # Output cols 4..127 are all-zero weight/bias -> stay zero; sliced off
    # in the wrapper.  Full 128-lane store -> unmasked `vst`.
    o_ref[...] = (
        jnp.dot(h, w2_ref[...], preferred_element_type=jnp.float32) + b2_ref[...]
    )


def classifier_forward(x, w1, b1, wh, bh, w2, b2, *, block_b=MAX_TB):
    """x: [B, 32] f32, padded params (HID_PAD / OUT_PAD wide) -> logits [B, 4] f32."""
    B = x.shape[0]
    # Batch tile: multiple of 8, at most block_b, at least enough to cover B.
    tb = min(block_b, max(8, ((B + 7) // 8) * 8))
    b_pad = ((B + tb - 1) // tb) * tb
    if b_pad != B:
        x = jnp.pad(x, ((0, b_pad - B), (0, 0)))
    grid = (b_pad // tb,)

    flops = 2 * b_pad * (
        IN_DIM * HID_PAD + NUM_LAYERS * HID_PAD * HID_PAD + HID_PAD * OUT_PAD
    )
    weight_bytes = 4 * (
        IN_DIM * HID_PAD
        + NUM_LAYERS * HID_PAD * HID_PAD
        + HID_PAD * OUT_PAD
        + (1 + NUM_LAYERS) * HID_PAD
        + OUT_PAD
    )
    bytes_accessed = b_pad * (IN_DIM + OUT_PAD) * 4 + weight_bytes

    out = pl.pallas_call(
        _mlp_kernel,
        out_shape=jax.ShapeDtypeStruct((b_pad, OUT_PAD), jnp.float32),
        grid=grid,
        in_specs=[
            # batch-tiled activations
            pl.BlockSpec((tb, IN_DIM), lambda i: (i, 0)),
            # weights/biases: constant index_map -> VMEM-resident across steps
            pl.BlockSpec((IN_DIM, HID_PAD), lambda i: (0, 0)),
            pl.BlockSpec((1, HID_PAD), lambda i: (0, 0)),
            pl.BlockSpec((NUM_LAYERS, HID_PAD, HID_PAD), lambda i: (0, 0, 0)),
            pl.BlockSpec((NUM_LAYERS, 1, HID_PAD), lambda i: (0, 0, 0)),
            pl.BlockSpec((HID_PAD, OUT_PAD), lambda i: (0, 0)),
            pl.BlockSpec((1, OUT_PAD), lambda i: (0, 0)),
        ],
        out_specs=pl.BlockSpec((tb, OUT_PAD), lambda i: (i, 0)),
        compiler_params=pltpu.CompilerParams(
            dimension_semantics=("parallel",),  # shard batch across TCs on v7x
        ),
        cost_estimate=pl.CostEstimate(
            flops=flops, transcendentals=0, bytes_accessed=bytes_accessed
        ),
    )(x, w1, b1, wh, bh, w2, b2)

    # Slice back to the logical batch / output width (layout plumbing in XLA).
    return out[:B, :OUT_DIM]


def init_params(key):
    """Logical (124-wide) params mirroring the PyTorch module's __init__.

    fc1 / fc2: weights ~ U(0, 1), biases zero (as in the PyTorch code).
    hidden Linear(124,124): PyTorch default U(-1/sqrt(124), 1/sqrt(124)) for
    both weight and bias.
    Weights are stored as [in, out] (transpose of PyTorch's [out, in]).
    """
    k1, k2, k3, k4 = jax.random.split(key, 4)
    w1 = jax.random.uniform(k1, (IN_DIM, HID_DIM), jnp.float32, 0.0, 1.0)
    b1 = jnp.zeros((1, HID_DIM), jnp.float32)

    bound = 1.0 / jnp.sqrt(jnp.float32(HID_DIM))
    wh = jax.random.uniform(
        k2, (NUM_LAYERS, HID_DIM, HID_DIM), jnp.float32, -bound, bound
    )
    bh = jax.random.uniform(
        k3, (NUM_LAYERS, 1, HID_DIM), jnp.float32, -bound, bound
    )

    w2 = jax.random.uniform(k4, (HID_DIM, OUT_DIM), jnp.float32, 0.0, 1.0)
    b2 = jnp.zeros((1, OUT_DIM), jnp.float32)
    return w1, b1, wh, bh, w2, b2


def pad_params(w1, b1, wh, bh, w2, b2):
    """Zero-pad hidden 124 -> 128 and output 4 -> 128 (once, off the hot path).

    Padded hidden lanes stay exactly zero through bias-add and ReLU, and
    padded output columns stay exactly zero, so results are bit-identical to
    the unpadded computation after slicing.
    """
    p = HID_PAD - HID_DIM
    q = OUT_PAD - OUT_DIM
    return (
        jnp.pad(w1, ((0, 0), (0, p))),
        jnp.pad(b1, ((0, 0), (0, p))),
        jnp.pad(wh, ((0, 0), (0, p), (0, p))),
        jnp.pad(bh, ((0, 0), (0, 0), (0, p))),
        jnp.pad(w2, ((0, p), (0, q))),
        jnp.pad(b2, ((0, 0), (0, q))),
    )


def reference_forward(x, w1, b1, wh, bh, w2, b2):
    """Pure-JAX reference on the unpadded (124-wide) parameters."""
    h = jnp.maximum(x @ w1 + b1, 0.0)
    for l in range(NUM_LAYERS):
        h = jnp.maximum(h @ wh[l] + bh[l], 0.0)
    return h @ w2 + b2


if __name__ == "__main__":
    key = jax.random.PRNGKey(0)
    kx, kp = jax.random.split(key)

    B = 8  # small, sublane-aligned batch
    x = jax.random.normal(kx, (B, IN_DIM), jnp.float32)

    params = init_params(kp)
    padded = pad_params(*params)

    out = jax.jit(classifier_forward)(x, *padded)
    out = jax.block_until_ready(out)

    ref = reference_forward(x, *params)
    assert out.shape == (B, OUT_DIM)
    assert jnp.allclose(out, ref, atol=1e-4, rtol=1e-4), "mismatch vs reference"

    print("KERNEL_OK")
</pallas_src>

<mosaic_0001>
module attributes {stable_mosaic.version = 11 : i64} {
  func.func @_mlp_kernel(%arg0: i32, %arg1: memref<8x32xf32, #tpu.memory_space<vmem>>, %arg2: memref<32x128xf32, #tpu.memory_space<vmem>>, %arg3: memref<1x128xf32, #tpu.memory_space<vmem>>, %arg4: memref<1x128x128xf32, #tpu.memory_space<vmem>>, %arg5: memref<1x1x128xf32, #tpu.memory_space<vmem>>, %arg6: memref<128x128xf32, #tpu.memory_space<vmem>>, %arg7: memref<1x128xf32, #tpu.memory_space<vmem>>, %arg8: memref<8x128xf32, #tpu.memory_space<vmem>>) attributes {dimension_semantics = [#tpu.dimension_semantics<parallel>], iteration_bounds = array<i64: 1>, scalar_prefetch = 0 : i64, scratch_operands = 0 : i64, tpu.core_type = #tpu.core_type<tc>, window_params = [{transform_indices = @transform_0, window_bounds = array<i64: 8, 32>}, {pipeline_mode = #tpu.pipeline_mode<synchronous>, transform_indices = @transform_1, window_bounds = array<i64: 32, 128>}, {pipeline_mode = #tpu.pipeline_mode<synchronous>, transform_indices = @transform_2, window_bounds = array<i64: 1, 128>}, {pipeline_mode = #tpu.pipeline_mode<synchronous>, transform_indices = @transform_3, window_bounds = array<i64: 1, 128, 128>}, {pipeline_mode = #tpu.pipeline_mode<synchronous>, transform_indices = @transform_4, window_bounds = array<i64: 1, 1, 128>}, {pipeline_mode = #tpu.pipeline_mode<synchronous>, transform_indices = @transform_5, window_bounds = array<i64: 128, 128>}, {pipeline_mode = #tpu.pipeline_mode<synchronous>, transform_indices = @transform_6, window_bounds = array<i64: 1, 128>}, {transform_indices = @transform_7, window_bounds = array<i64: 8, 128>}]} {
    %c0 = arith.constant 0 : index
    %c0_0 = arith.constant 0 : index
    %0 = vector.load %arg1[%c0, %c0_0] : memref<8x32xf32, #tpu.memory_space<vmem>>, vector<8x32xf32>
    %c0_1 = arith.constant 0 : index
    %c0_2 = arith.constant 0 : index
    %1 = vector.load %arg2[%c0_1, %c0_2] : memref<32x128xf32, #tpu.memory_space<vmem>>, vector<32x128xf32>
    %cst = arith.constant dense<0.000000e+00> : vector<8x128xf32>
    %2 = tpu.matmul %0, %1, %cst {dimension_numbers = #tpu.dot_dimension_numbers<[1], [0], [0], [1], [0, 0, 1, 1], [], []>} : vector<8x32xf32>, vector<32x128xf32>, vector<8x128xf32> -> vector<8x128xf32>
    %c0_3 = arith.constant 0 : index
    %c0_4 = arith.constant 0 : index
    %3 = vector.load %arg3[%c0_3, %c0_4] : memref<1x128xf32, #tpu.memory_space<vmem>>, vector<1x128xf32>
    %4 = vector.broadcast %3 : vector<1x128xf32> to vector<8x128xf32>
    %5 = arith.addf %2, %4 : vector<8x128xf32>
    %cst_5 = arith.constant 0.000000e+00 : f32
    %6 = vector.broadcast %cst_5 : f32 to vector<8x128xf32>
    %7 = arith.maximumf %5, %6 : vector<8x128xf32>
    %c0_6 = arith.constant 0 : index
    %c0_7 = arith.constant 0 : index
    %c0_8 = arith.constant 0 : index
    %8 = vector.load %arg4[%c0_6, %c0_7, %c0_8] : memref<1x128x128xf32, #tpu.memory_space<vmem>>, vector<1x128x128xf32>
    %9 = vector.shape_cast %8 : vector<1x128x128xf32> to vector<128x128xf32>
    %cst_9 = arith.constant dense<0.000000e+00> : vector<8x128xf32>
    %10 = tpu.matmul %7, %9, %cst_9 {dimension_numbers = #tpu.dot_dimension_numbers<[1], [0], [0], [1], [0, 0, 1, 1], [], []>} : vector<8x128xf32>, vector<128x128xf32>, vector<8x128xf32> -> vector<8x128xf32>
    %c0_10 = arith.constant 0 : index
    %c0_11 = arith.constant 0 : index
    %c0_12 = arith.constant 0 : index
    %11 = vector.load %arg5[%c0_10, %c0_11, %c0_12] : memref<1x1x128xf32, #tpu.memory_space<vmem>>, vector<1x1x128xf32>
    %12 = vector.shape_cast %11 : vector<1x1x128xf32> to vector<1x128xf32>
    %13 = vector.broadcast %12 : vector<1x128xf32> to vector<8x128xf32>
    %14 = arith.addf %10, %13 : vector<8x128xf32>
    %cst_13 = arith.constant 0.000000e+00 : f32
    %15 = vector.broadcast %cst_13 : f32 to vector<8x128xf32>
    %16 = arith.maximumf %14, %15 : vector<8x128xf32>
    %c0_14 = arith.constant 0 : index
    %c0_15 = arith.constant 0 : index
    %17 = vector.load %arg6[%c0_14, %c0_15] : memref<128x128xf32, #tpu.memory_space<vmem>>, vector<128x128xf32>
    %cst_16 = arith.constant dense<0.000000e+00> : vector<8x128xf32>
    %18 = tpu.matmul %16, %17, %cst_16 {dimension_numbers = #tpu.dot_dimension_numbers<[1], [0], [0], [1], [0, 0, 1, 1], [], []>} : vector<8x128xf32>, vector<128x128xf32>, vector<8x128xf32> -> vector<8x128xf32>
    %c0_17 = arith.constant 0 : index
    %c0_18 = arith.constant 0 : index
    %19 = vector.load %arg7[%c0_17, %c0_18] : memref<1x128xf32, #tpu.memory_space<vmem>>, vector<1x128xf32>
    %20 = vector.broadcast %19 : vector<1x128xf32> to vector<8x128xf32>
    %21 = arith.addf %18, %20 : vector<8x128xf32>
    %c0_19 = arith.constant 0 : index
    %c0_20 = arith.constant 0 : index
    %22 = vector.load %arg8[%c0_19, %c0_20] : memref<8x128xf32, #tpu.memory_space<vmem>>, vector<8x128xf32>
    tpu.vector_store %arg8[%c0_19, %c0_20], %21 {strides = array<i32>} : memref<8x128xf32, #tpu.memory_space<vmem>>, vector<8x128xf32>,
    return
  }
  func.func @transform_0(%arg0: i32) -> (i32, i32) {
    %c0_i32 = arith.constant 0 : i32
    %c0_i32_0 = arith.constant 0 : i32
    return %arg0, %c0_i32 : i32, i32
  }
  func.func @transform_1(%arg0: i32) -> (i32, i32) {
    %c0_i32 = arith.constant 0 : i32
    %c0_i32_0 = arith.constant 0 : i32
    %c0_i32_1 = arith.constant 0 : i32
    return %c0_i32, %c0_i32_0 : i32, i32
  }
  func.func @transform_2(%arg0: i32) -> (i32, i32) {
    %c0_i32 = arith.constant 0 : i32
    %c0_i32_0 = arith.constant 0 : i32
    %c0_i32_1 = arith.constant 0 : i32
    return %c0_i32, %c0_i32_0 : i32, i32
  }
  func.func @transform_3(%arg0: i32) -> (i32, i32, i32) {
    %c0_i32 = arith.constant 0 : i32
    %c0_i32_0 = arith.constant 0 : i32
    %c0_i32_1 = arith.constant 0 : i32
    %c0_i32_2 = arith.constant 0 : i32
    return %c0_i32, %c0_i32_0, %c0_i32_1 : i32, i32, i32
  }
  func.func @transform_4(%arg0: i32) -> (i32, i32, i32) {
    %c0_i32 = arith.constant 0 : i32
    %c0_i32_0 = arith.constant 0 : i32
    %c0_i32_1 = arith.constant 0 : i32
    %c0_i32_2 = arith.constant 0 : i32
    return %c0_i32, %c0_i32_0, %c0_i32_1 : i32, i32, i32
  }
  func.func @transform_5(%arg0: i32) -> (i32, i32) {
    %c0_i32 = arith.constant 0 : i32
    %c0_i32_0 = arith.constant 0 : i32
    %c0_i32_1 = arith.constant 0 : i32
    return %c0_i32, %c0_i32_0 : i32, i32
  }
  func.func @transform_6(%arg0: i32) -> (i32, i32) {
    %c0_i32 = arith.constant 0 : i32
    %c0_i32_0 = arith.constant 0 : i32
    %c0_i32_1 = arith.constant 0 : i32
    return %c0_i32, %c0_i32_0 : i32, i32
  }
  func.func @transform_7(%arg0: i32) -> (i32, i32) {
    %c0_i32 = arith.constant 0 : i32
    %c0_i32_0 = arith.constant 0 : i32
    return %arg0, %c0_i32 : i32, i32
  }
}

</mosaic_0001>

<bundles_post_ra>
// kernel: classifier_forward.1
= control target key start
LH: loop header
LB: loop body
LE: loop exit
PB: predicated region body
PF: predicated region fallthrough
CT: control target
= control target key end

     0   :  { %12 = vsyncpa [#allocation3], 0  ;;  %s781_s0 = inlined_call_operand.hbm [shape: f32[8,32], index: 0, kind: input, shape index: {}]   ;;  %s782_s1 = inlined_call_operand.hbm [shape: f32[32,128], index: 1, kind: input, shape index: {}]   ;;  %s783_s2 = inlined_call_operand.vmem [shape: f32[1,128], index: 2, kind: input, shape index: {}]   ;;  %s784_s3 = inlined_call_operand.hbm [shape: f32[1,128,128], index: 3, kind: input, shape index: {}]   ;;  %s785_s4 = inlined_call_operand.vmem [shape: f32[1,1,128], index: 4, kind: input, shape index: {}]   ;;  %s786_s5 = inlined_call_operand.hbm [shape: f32[128,128], index: 5, kind: input, shape index: {}]   ;;  %s787_s6 = inlined_call_operand.vmem [shape: f32[1,128], index: 6, kind: input, shape index: {}]   ;;  %s788_s7 = inlined_call_operand.vmem [shape: f32[8,128], index: 7, kind: output, shape index: {}]  }
   0x1   :  { %13 = vsyncpa [#allocation5], 0 }
   0x2   :  { %14 = vsyncpa [#allocation8], 0  ;;  %s642_s24 = smov [#allocation4]   ;;  %s548_s28 = scalar_lea.hbm %s782_s1, 512 }
   0x3   :  { %s30_s25 = sshll.u32 %s642_s24, 4  ;;  %p549_p0 = scmp.ne.s32.totalorder %s782_s1, %s548_s28  ;;  %s31_s25 = int_to_ptr.vmem [resolvable:$true] %s30_s25 }
   0x4   :  { %p552_p1 = scmp.lt.u32.totalorder %s548_s28, %s782_s1 }
   0x6   :  { %p554_p2 = pnand %p552_p1, %p549_p0 }
   0x8   :  { %557 = shalt.err (!%p554_p2)
}
   0x9   :  { %s558_s10 = scalar_lea.vmem %s31_s25, 512  ;;  %p563_p4 = scmp.lt.s32.totalorder %s31_s25, %s31_s25 }
   0xa   :  { %p559_p3 = scmp.ne.s32.totalorder %s31_s25, %s558_s10  ;;  %p564_p5 = scmp.lt.s32.totalorder %s558_s10, %s558_s10 }
   0xc   :  { %p565_p6 = por %p564_p5, %p563_p4 }
   0xe   :  { %p566_p7 = pnand %p565_p6, %p559_p3 }
  0x10   :  { %569 = shalt.err (!%p566_p7)
}
  0x11   :  { %s643_s11 = smov 128   ;;  %s644_s12 = smov 8  }
  0x12   :  { %36 = dma.hbm_to_vmem [thread:$0]  %s782_s1, 512, %s31_s25, [#allocation5], %s643_s11, %s643_s11, %s644_s12  }
  0x13   :  { %s645_s15 = smov [#allocation2]   ;;  %s646_s17 = smov [#allocation6]  }
  0x14   :  { %s21_s16 = sshll.u32 %s645_s15, 4  ;;  %s44_s18 = sshll.u32 %s646_s17, 4  ;;  %s22_s16 = int_to_ptr.vmem [resolvable:$true] %s21_s16  ;;  %s45_s18 = int_to_ptr.vmem [resolvable:$true] %s44_s18 }
  0x15   :  { %s570_s21 = scalar_lea.hbm %s781_s0, 128 }
  0x16   :  { %p571_p8 = scmp.ne.s32.totalorder %s781_s0, %s570_s21  ;;  %p574_p9 = scmp.lt.u32.totalorder %s570_s21, %s781_s0 }
  0x18   :  { %p576_p10 = pnand %p574_p9, %p571_p8 }
  0x1a   :  { %579 = shalt.err (!%p576_p10)
}
  0x1b   :  { %s580_s1 = scalar_lea.vmem %s22_s16, 128  ;;  %p585_p12 = scmp.lt.s32.totalorder %s22_s16, %s22_s16 }
  0x1c   :  { %p581_p11 = scmp.ne.s32.totalorder %s22_s16, %s580_s1  ;;  %p586_p13 = scmp.lt.s32.totalorder %s580_s1, %s580_s1 }
  0x1e   :  { %p587_p0 = por %p586_p13, %p585_p12 }
  0x20   :  { %p588_p1 = pnand %p587_p0, %p581_p11 }
  0x22   :  { %591 = shalt.err (!%p588_p1)
}
  0x23   :  { %24 = dma.hbm_to_vmem [thread:$0]  %s781_s0, 128, %s22_s16, [#allocation3]  }
  0x24   :  { %s592_s30 = scalar_lea.hbm %s784_s3, 2048 }
  0x25   :  { %p593_p2 = scmp.ne.s32.totalorder %s784_s3, %s592_s30  ;;  %p596_p3 = scmp.lt.u32.totalorder %s592_s30, %s784_s3 }
  0x27   :  { %p598_p4 = pnand %p596_p3, %p593_p2 }
  0x29   :  { %601 = shalt.err (!%p598_p4)
}
  0x2a   :  { %s602_s14 = scalar_lea.vmem %s45_s18, 2048  ;;  %p607_p6 = scmp.lt.s32.totalorder %s45_s18, %s45_s18 }
  0x2b   :  { %p603_p5 = scmp.ne.s32.totalorder %s45_s18, %s602_s14  ;;  %p608_p7 = scmp.lt.s32.totalorder %s602_s14, %s602_s14 }
  0x2d   :  { %p609_p8 = por %p608_p7, %p607_p6 }
  0x2f   :  { %p610_p9 = pnand %p609_p8, %p603_p5 }
  0x31   :  { %613 = shalt.err (!%p610_p9)
}
  0x32   :  { %50 = dma.hbm_to_vmem [thread:$0]  %s784_s3, 2048, %s45_s18, [#allocation5], %s643_s11, %s643_s11, %s644_s12  }
  0x33   :  { %s647_s16 = smov [#allocation7]   ;;  %s614_s21 = scalar_lea.hbm %s786_s5, 2048 }
  0x34   :  { %s58_s17 = sshll.u32 %s647_s16, 4  ;;  %p615_p10 = scmp.ne.s32.totalorder %s786_s5, %s614_s21  ;;  %s59_s17 = int_to_ptr.vmem [resolvable:$true] %s58_s17 }
  0x35   :  { %p618_p11 = scmp.lt.u32.totalorder %s614_s21, %s786_s5 }
  0x37   :  { %p620_p12 = pnand %p618_p11, %p615_p10 }
  0x39   :  { %623 = shalt.err (!%p620_p12)
}
  0x3a   :  { %s624_s1 = scalar_lea.vmem %s59_s17, 2048  ;;  %p629_p0 = scmp.lt.s32.totalorder %s59_s17, %s59_s17 }
  0x3b   :  { %p625_p13 = scmp.ne.s32.totalorder %s59_s17, %s624_s1  ;;  %p630_p1 = scmp.lt.s32.totalorder %s624_s1, %s624_s1 }
  0x3d   :  { %p631_p2 = por %p630_p1, %p629_p0 }
  0x3f   :  { %p632_p3 = pnand %p631_p2, %p625_p13 }
  0x41   :  { %635 = shalt.err (!%p632_p3)
}
  0x42   :  { %64 = dma.hbm_to_vmem [thread:$0]  %s786_s5, 2048, %s59_s17, [#allocation8], %s643_s11, %s643_s11, %s644_s12  }
  0x43   :  { %636 = dma.done.wait [#allocation3], 128  }
  0x44   :  { %637 = vsyncadd [#allocation3], 4294967168 }
  0x45   :  { %638 = dma.done.wait [#allocation5], 2560  }
  0x46   :  { %639 = vsyncadd [#allocation5], 4294964736 }
  0x47   :  { %640 = dma.done.wait [#allocation8], 2048  }
  0x48   :  { %641 = vsyncadd [#allocation8], 4294965248  ;;  %v648_v0 = vmov 0.0|0.0   ;;  %vm649_vm0 = vmmov 0   ;;  %v650_v1 = vmov 0.0   ;;  %v80_v2 = vld [vmem:[#allocation4] sm:$0xff] }
  0x49   :  { %485 = vmatprep.subr.bf16.mxu0 %v648_v0  ;;  %412 = vmatprep.mubr.msk.f32.mxu0 %vm649_vm0, %v650_v1  ;;  %v81_v3 = vld [vmem:[#allocation4 + $0x8] sm:$0xff]  ;;  %v82_v4 = vld [vmem:[#allocation4 + $0x10] sm:$0xff]  ;;  %v83_v6 = vld [vmem:[#allocation4 + $0x18] sm:$0xff]  ;;  %vm91_vm1 = vcmask 261120  }
  0x4a   :  { %491 = vmatprep.subr.bf16.mxu1 %v648_v0  ;;  %447 = vmatprep.mubr.msk.f32.mxu1 %vm649_vm0, %v650_v1  ;;  %v486_v5 = vpack.c.bf16 %v81_v3, %v80_v2  ;;  %v166_v7 = vld [vmem:[#allocation6] sm:$0xff]  ;;  %v167_v8 = vld [vmem:[#allocation6 + $0x8] sm:$0xff]  ;;  %v168_v9 = vld [vmem:[#allocation6 + $0x10] sm:$0xff]  ;;  %v489_v11 = vpack.c.bf16 %v83_v6, %v82_v4 }
  0x4b   :  { %v169_v10 = vld [vmem:[#allocation6 + $0x18] sm:$0xff]  ;;  %v492_v12 = vpack.c.bf16 %v167_v8, %v166_v7  ;;  %v170_v14 = vld [vmem:[#allocation6 + $0x20] sm:$0xff]  ;;  %v171_v15 = vld [vmem:[#allocation6 + $0x28] sm:$0xff] }
  0x4c   :  { %487 = vmatpush3.bf16.msra.mxu0 %v486_v5  ;;  %v495_v13 = vpack.c.bf16 %v169_v10, %v168_v9  ;;  %v79_v16 = vld [vmem:[#allocation2] sm:$0xff]  ;;  %v498_v17 = vpack.c.bf16 %v171_v15, %v170_v14  ;;  %v172_v18 = vld [vmem:[#allocation6 + $0x30] sm:$0xff]  ;;  %v174_v21 = vld [vmem:[#allocation6 + $0x40] sm:$0xff] }
  0x4d   :  { %488 = vmatprep.subr.bf16.mxu0 %v648_v0  ;;  %493 = vmatpush3.bf16.msra.mxu1 %v492_v12  ;;  %v173_v19 = vld [vmem:[#allocation6 + $0x38] sm:$0xff]  ;;  %v175_v22 = vld [vmem:[#allocation6 + $0x48] sm:$0xff]  ;;  %v176_v24 = vld [vmem:[#allocation6 + $0x50] sm:$0xff] }
  0x4e   :  { %494 = vmatprep.subr.bf16.mxu1 %v648_v0  ;;  %v501_v20 = vpack.c.bf16 %v173_v19, %v172_v18  ;;  %v504_v23 = vpack.c.bf16 %v175_v22, %v174_v21  ;;  %v177_v25 = vld [vmem:[#allocation6 + $0x58] sm:$0xff]  ;;  %v178_v27 = vld [vmem:[#allocation6 + $0x60] sm:$0xff]  ;;  %v179_v28 = vld [vmem:[#allocation6 + $0x68] sm:$0xff] }
  0x4f   :  { %v507_v26 = vpack.c.bf16 %v177_v25, %v176_v24  ;;  %v510_v29 = vpack.c.bf16 %v179_v28, %v178_v27  ;;  %v180_v30 = vld [vmem:[#allocation6 + $0x70] sm:$0xff]  ;;  %v181_v31 = vld [vmem:[#allocation6 + $0x78] sm:$0xff]  ;;  %v260_v33 = vld [vmem:[#allocation7] sm:$0xff] }
  0x50   :  { %490 = vmatpush3.bf16.msra.mxu0 %v489_v11  ;;  %v513_v32 = vpack.c.bf16 %v181_v31, %v180_v30  ;;  %v261_v34 = vld [vmem:[#allocation7 + $0x8] sm:$0xff]  ;;  %v262_v35 = vld [vmem:[#allocation7 + $0x10] sm:$0xff]  ;;  %v263_v37 = vld [vmem:[#allocation7 + $0x18] sm:$0xff] }
  0x51   :  { %515 = vmatprep.subr.bf16.mxu0 %v648_v0  ;;  %496 = vmatpush3.bf16.msra.mxu1 %v495_v13  ;;  %v516_v36 = vpack.c.bf16 %v261_v34, %v260_v33  ;;  %v519_v38 = vpack.c.bf16 %v263_v37, %v262_v35  ;;  %v264_v39 = vld [vmem:[#allocation7 + $0x20] sm:$0xff]  ;;  %v265_v40 = vld [vmem:[#allocation7 + $0x28] sm:$0xff]  ;;  %v266_v42 = vld [vmem:[#allocation7 + $0x30] sm:$0xff] }
  0x52   :  { %497 = vmatprep.subr.bf16.mxu1 %v648_v0  ;;  %v522_v41 = vpack.c.bf16 %v265_v40, %v264_v39  ;;  %v267_v43 = vld [vmem:[#allocation7 + $0x38] sm:$0xff]  ;;  %v268_v45 = vld [vmem:[#allocation7 + $0x40] sm:$0xff]  ;;  %v269_v46 = vld [vmem:[#allocation7 + $0x48] sm:$0xff] }
  0x53   :  { %413 = vmatmul.mubr.msk.f32.vlgmr.msra.gmra.mrb[0].mxu0 %vm91_vm1, %v79_v16  ;;  %v525_v44 = vpack.c.bf16 %v267_v43, %v266_v42  ;;  %v528_v47 = vpack.c.bf16 %v269_v46, %v268_v45  ;;  %v270_v48 = vld [vmem:[#allocation7 + $0x50] sm:$0xff]  ;;  %v271_v49 = vld [vmem:[#allocation7 + $0x58] sm:$0xff]  ;;  %v272_v51 = vld [vmem:[#allocation7 + $0x60] sm:$0xff] }
  0x54   :  { %482 = vmatprep.mubr.msk.f32.mxu0 %vm649_vm0, %v650_v1  ;;  %517 = vmatpush3.bf16.msra.mxu0 %v516_v36  ;;  %v531_v50 = vpack.c.bf16 %v271_v49, %v270_v48  ;;  %v273_v52 = vld [vmem:[#allocation7 + $0x68] sm:$0xff]  ;;  %v361_v54 = vld [vmem:[%s783_s2] ss:$0 sm:$0xff]  ;;  %v274_v59 = vld [vmem:[#allocation7 + $0x70] sm:$0xff] }
  0x55   :  { %499 = vmatpush3.bf16.msra.mxu1 %v498_v17  ;;  %518 = vmatprep.subr.bf16.mxu0 %v648_v0  ;;  %v534_v53 = vpack.c.bf16 %v273_v52, %v272_v51  ;;  %v275_v60 = vld [vmem:[#allocation7 + $0x78] sm:$0xff] }
  0x56   :  { %500 = vmatprep.subr.bf16.mxu1 %v648_v0  ;;  %v537_v61 = vpack.c.bf16 %v275_v60, %v274_v59  ;;  %v363_v62 = vld [vmem:[%s785_s4] ss:$0 sm:$0xff] }
  0x57   :  { %v364_v3 = vld [vmem:[%s787_s6] ss:$0 sm:$0xff] }
  0x58   :  { %520 = vmatpush3.bf16.msra.mxu0 %v519_v38 }
  0x59   :  { %502 = vmatpush3.bf16.msra.mxu1 %v501_v20  ;;  %521 = vmatprep.subr.bf16.mxu0 %v648_v0 }
  0x5a   :  { %503 = vmatprep.subr.bf16.mxu1 %v648_v0 }
  0x5c   :  { %523 = vmatpush3.bf16.msra.mxu0 %v522_v41 }
  0x5d   :  { %505 = vmatpush3.bf16.msra.mxu1 %v504_v23  ;;  %524 = vmatprep.subr.bf16.mxu0 %v648_v0 }
  0x5e   :  { %506 = vmatprep.subr.bf16.mxu1 %v648_v0 }
  0x60   :  { %526 = vmatpush3.bf16.msra.mxu0 %v525_v44 }
  0x61   :  { %508 = vmatpush3.bf16.msra.mxu1 %v507_v26  ;;  %527 = vmatprep.subr.bf16.mxu0 %v648_v0 }
  0x62   :  { %509 = vmatprep.subr.bf16.mxu1 %v648_v0 }
  0x64   :  { %529 = vmatpush3.bf16.msra.mxu0 %v528_v47 }
  0x65   :  { %511 = vmatpush3.bf16.msra.mxu1 %v510_v29  ;;  %530 = vmatprep.subr.bf16.mxu0 %v648_v0 }
  0x66   :  { %512 = vmatprep.subr.bf16.mxu1 %v648_v0 }
  0x68   :  { %532 = vmatpush3.bf16.msra.mxu0 %v531_v50 }
  0x69   :  { %514 = vmatpush3.bf16.msra.mxu1 %v513_v32  ;;  %533 = vmatprep.subr.bf16.mxu0 %v648_v0 }
  0x6c   :  { %535 = vmatpush3.bf16.msra.mxu0 %v534_v53 }
  0x6d   :  { %536 = vmatprep.subr.bf16.mxu0 %v648_v0 }
  0x70   :  { %538 = vmatpush3.bf16.msra.mxu0 %v537_v61 }
 0x126   :  { %v161_v55 = vpop.f32.mrb[0].mxu0 }
 0x127   :  { %v162_v56 = vadd.f32 %v361_v54, %v161_v55  ;;  %v414_v57 = vpop.f32.mrb[1].mxu0 }
 0x129   :  { %v165_v58 = vmax.f32 %v162_v56, 0.0 }
 0x12b   :  { %448 = vmatmul.mubr.f32.vlgmr.msra.gmra.mrb[0].mxu1 %v165_v58 }
 0x1fe   :  { %v255_v63 = vpop.f32.mrb[0].mxu1 }
 0x1ff   :  { %v256_v1 = vadd.f32 %v363_v62, %v255_v63  ;;  %v449_v0 = vpop.f32.mrb[1].mxu1 }
 0x201   :  { %v259_v2 = vmax.f32 %v256_v1, 0.0 }
 0x203   :  { %483 = vmatmul.mubr.f32.vlgmr.msra.gmra.mrb[2].mxu0 %v259_v2 }
 0x2d6   :  { %v349_v4 = vpop.f32.mrb[2].mxu0 }
 0x2d7   :  { %v350_v5 = vadd.f32 %v364_v3, %v349_v4  ;;  %v484_v6 = vpop.f32.mrb[3].mxu0 }
 0x2d9   :  { %353 = vst [vmem:[%s788_s7] sm:$0xff] %v350_v5 }
 0x2da   :  { %358 = vsyncpa [#allocation3], 1 }
 0x2db   :  { %359 = vsyncpa [#allocation5], 1 }
 0x2dc   :  { %360 = vsyncpa [#allocation8], 1 }

</bundles_post_ra>
